<compile_context>
chip_gen: v5e
topology: v5e:2x2
jax: 0.10.0
libtpu: 0.0.40
codegen_flags: <defaults>
</compile_context>

<pallas_src>
import jax
import jax.numpy as jnp
import numpy as np
from jax.experimental import pallas as pl
from jax.experimental.pallas import tpu as pltpu


EMBEDDING_DIM = 10                       # D
NUM_FIELDS = 7                           # user, book, location, age, author, year, publisher
OUT_DIM = NUM_FIELDS * EMBEDDING_DIM     # 70


def embedding_net_kernel(
    # --- scalar-prefetch refs (SMEM, full (B,) int32 index vectors) ---
    uid_ref, bid_ref, lid_ref, aid_ref, pid_ref,
    # --- regular inputs (VMEM) ---
    age_ref, year_ref,                                   # (tb, 1) f32
    user_t, book_t, loc_t, auth_t, pub_t,                # (N_x, D) f32, full tables
    age_w_ref, age_b_ref, year_w_ref, year_b_ref,        # (1, D) f32
    # --- output ---
    out_ref,                                             # (tb, 7*D) f32
):
    D = EMBEDDING_DIM
    tb = out_ref.shape[0]
    base = pl.program_id(0) * tb

    # Age / year Linear(1, D): VPU broadcast multiply-add, stored directly into
    # the output block.  (tb,1) * (1,D) + (1,D) -> (tb,D)
    out_ref[:, 3 * D:4 * D] = age_ref[...] * age_w_ref[...] + age_b_ref[...]
    out_ref[:, 5 * D:6 * D] = year_ref[...] * year_w_ref[...] + year_b_ref[...]

    # On-chip gather from VMEM-resident tables: one dynamic-sublane-slice load
    # plus one masked lane-slice store per (row, field).  Concat order matches
    # the PyTorch forward: [user, book, location, age, author, year, publisher].
    fields = (
        (uid_ref, user_t, 0),   # lanes [0*D, 1*D)
        (bid_ref, book_t, 1),   # lanes [1*D, 2*D)
        (lid_ref, loc_t, 2),    # lanes [2*D, 3*D)
        (aid_ref, auth_t, 4),   # lanes [4*D, 5*D)
        (pid_ref, pub_t, 6),    # lanes [6*D, 7*D)
    )
    # Python-unrolled over rows (tb is small in the demo).  For tb >= ~32 this
    # should become a lax.fori_loop to keep program size bounded.
    for idx_ref, tbl, f in fields:
        for r in range(tb):
            row = tbl[pl.ds(idx_ref[base + r], 1), :]        # (1, D)
            out_ref[r:r + 1, f * D:(f + 1) * D] = row


def embedding_net_forward(user_id, book_id, location_id, age, author_id, year,
                          publisher_id, params, *, tb=8):
    """Index args: (B,) int-like; age/year: (B, 1) float.  Returns (B, 7*D) f32.

    tb guidance: v5e/v6e (single TC) -> large tb (128-256) once B allows it;
    v7x (two TCs) -> keep grid = B//tb even and >= 2.
    """
    B = user_id.shape[0]
    D = EMBEDDING_DIM
    tb = min(tb, B)
    assert tb % 8 == 0 or tb == B, "tb should be a multiple of 8 (or equal B)"
    assert B % tb == 0, "B must be a multiple of tb"

    uid = user_id.reshape(B).astype(jnp.int32)
    bid = book_id.reshape(B).astype(jnp.int32)
    lid = location_id.reshape(B).astype(jnp.int32)
    aid = author_id.reshape(B).astype(jnp.int32)
    pid = publisher_id.reshape(B).astype(jnp.int32)
    age = age.reshape(B, 1).astype(jnp.float32)
    year = year.reshape(B, 1).astype(jnp.float32)

    tables = (params["user_emb"], params["book_emb"], params["loc_emb"],
              params["auth_emb"], params["pub_emb"])
    lin = (params["age_w"], params["age_b"], params["year_w"], params["year_b"])

    # Every index_map receives (grid_idx, *scalar_prefetch_refs) positionally.
    vec_spec = pl.BlockSpec((tb, 1), lambda i, u, b, l, a, p: (i, 0))
    par_spec = pl.BlockSpec((1, D), lambda i, u, b, l, a, p: (0, 0))

    def table_spec(t):
        # Full-table block; block index is constant so the table is fetched to
        # VMEM once and stays resident across grid steps.
        return pl.BlockSpec(t.shape, lambda i, u, b, l, a, p: (0, 0))

    in_specs = ([vec_spec, vec_spec]                 # age, year
                + [table_spec(t) for t in tables]    # embedding tables (VMEM)
                + [par_spec] * 4)                    # linear weights / biases
    out_spec = pl.BlockSpec((tb, OUT_DIM), lambda i, u, b, l, a, p: (i, 0))

    table_bytes = sum(int(np.prod(t.shape)) for t in tables) * 4
    cost = pl.CostEstimate(
        flops=4 * B * D,                  # two (mul+add) broadcast FMAs per row
        transcendentals=0,
        bytes_accessed=B * (5 * 4 + 2 * 4 + OUT_DIM * 4) + table_bytes + 4 * D * 4,
    )

    return pl.pallas_call(
        embedding_net_kernel,
        out_shape=jax.ShapeDtypeStruct((B, OUT_DIM), jnp.float32),
        grid_spec=pltpu.PrefetchScalarGridSpec(
            num_scalar_prefetch=5,
            grid=(B // tb,),
            in_specs=in_specs,
            out_specs=out_spec,
        ),
        compiler_params=pltpu.CompilerParams(
            dimension_semantics=("parallel",),
        ),
        cost_estimate=cost,
    )(uid, bid, lid, aid, pid, age, year, *tables, *lin)


def init_params(key, num_users, num_books, num_locations, num_authors,
                num_publishers, D):
    ks = jax.random.split(key, 9)
    return {
        "user_emb": jax.random.normal(ks[0], (num_users, D), jnp.float32),
        "book_emb": jax.random.normal(ks[1], (num_books, D), jnp.float32),
        "loc_emb":  jax.random.normal(ks[2], (num_locations, D), jnp.float32),
        "auth_emb": jax.random.normal(ks[3], (num_authors, D), jnp.float32),
        "pub_emb":  jax.random.normal(ks[4], (num_publishers, D), jnp.float32),
        # nn.Linear(1, D): y = x @ W^T + b; store W^T directly as (1, D)
        "age_w":  jax.random.normal(ks[5], (1, D), jnp.float32) * 0.1,
        "age_b":  jax.random.normal(ks[6], (1, D), jnp.float32) * 0.1,
        "year_w": jax.random.normal(ks[7], (1, D), jnp.float32) * 0.1,
        "year_b": jax.random.normal(ks[8], (1, D), jnp.float32) * 0.1,
    }


def reference_forward(uid, bid, lid, age, aid, year, pid, p):
    user_e = p["user_emb"][uid]
    book_e = p["book_emb"][bid]
    loc_e = p["loc_emb"][lid]
    auth_e = p["auth_emb"][aid]
    pub_e = p["pub_emb"][pid]
    age_e = age * p["age_w"] + p["age_b"]
    year_e = year * p["year_w"] + p["year_b"]
    return jnp.concatenate(
        [user_e, book_e, loc_e, age_e, auth_e, year_e, pub_e], axis=-1)


if __name__ == "__main__":
    key = jax.random.PRNGKey(0)
    B = 16
    num_users, num_books = 32, 48
    num_locations, num_authors, num_publishers = 16, 24, 12
    D = EMBEDDING_DIM

    kp, k1, k2, k3, k4, k5, k6, k7 = jax.random.split(key, 8)
    params = init_params(kp, num_users, num_books, num_locations, num_authors,
                         num_publishers, D)

    user_id = jax.random.randint(k1, (B,), 0, num_users, jnp.int32)
    book_id = jax.random.randint(k2, (B,), 0, num_books, jnp.int32)
    location_id = jax.random.randint(k3, (B,), 0, num_locations, jnp.int32)
    author_id = jax.random.randint(k4, (B,), 0, num_authors, jnp.int32)
    publisher_id = jax.random.randint(k5, (B,), 0, num_publishers, jnp.int32)
    age = jax.random.uniform(k6, (B, 1), jnp.float32, 18.0, 80.0)
    year = jax.random.uniform(k7, (B, 1), jnp.float32, 1950.0, 2020.0)

    # tb=8 with B=16 -> even grid of 2 parallel steps (keeps both v7x TCs busy).
    out = embedding_net_forward(user_id, book_id, location_id, age, author_id,
                                year, publisher_id, params, tb=8)
    out = jax.block_until_ready(out)

    ref = reference_forward(user_id, book_id, location_id, age, author_id,
                            year, publisher_id, params)
    np.testing.assert_allclose(np.asarray(out), np.asarray(ref),
                               rtol=1e-5, atol=1e-5)
    assert out.shape == (B, NUM_FIELDS * D)
    print("KERNEL_OK")
</pallas_src>

<mosaic_0001>
module attributes {stable_mosaic.version = 11 : i64} {
  func.func @embedding_net_kernel(%arg0: i32, %arg1: memref<16xi32, #tpu.memory_space<smem>>, %arg2: memref<16xi32, #tpu.memory_space<smem>>, %arg3: memref<16xi32, #tpu.memory_space<smem>>, %arg4: memref<16xi32, #tpu.memory_space<smem>>, %arg5: memref<16xi32, #tpu.memory_space<smem>>, %arg6: memref<8x1xf32, #tpu.memory_space<vmem>>, %arg7: memref<8x1xf32, #tpu.memory_space<vmem>>, %arg8: memref<32x10xf32, #tpu.memory_space<vmem>>, %arg9: memref<48x10xf32, #tpu.memory_space<vmem>>, %arg10: memref<16x10xf32, #tpu.memory_space<vmem>>, %arg11: memref<24x10xf32, #tpu.memory_space<vmem>>, %arg12: memref<12x10xf32, #tpu.memory_space<vmem>>, %arg13: memref<1x10xf32, #tpu.memory_space<vmem>>, %arg14: memref<1x10xf32, #tpu.memory_space<vmem>>, %arg15: memref<1x10xf32, #tpu.memory_space<vmem>>, %arg16: memref<1x10xf32, #tpu.memory_space<vmem>>, %arg17: memref<8x70xf32, #tpu.memory_space<vmem>>) attributes {dimension_semantics = [#tpu.dimension_semantics<parallel>], iteration_bounds = array<i64: 2>, scalar_prefetch = 5 : i64, scratch_operands = 0 : i64, tpu.core_type = #tpu.core_type<tc>, window_params = [{transform_indices = @transform_0, window_bounds = array<i64: 8, 1>}, {transform_indices = @transform_1, window_bounds = array<i64: 8, 1>}, {pipeline_mode = #tpu.pipeline_mode<synchronous>, transform_indices = @transform_2, window_bounds = array<i64: 32, 10>}, {pipeline_mode = #tpu.pipeline_mode<synchronous>, transform_indices = @transform_3, window_bounds = array<i64: 48, 10>}, {pipeline_mode = #tpu.pipeline_mode<synchronous>, transform_indices = @transform_4, window_bounds = array<i64: 16, 10>}, {pipeline_mode = #tpu.pipeline_mode<synchronous>, transform_indices = @transform_5, window_bounds = array<i64: 24, 10>}, {pipeline_mode = #tpu.pipeline_mode<synchronous>, transform_indices = @transform_6, window_bounds = array<i64: 12, 10>}, {pipeline_mode = #tpu.pipeline_mode<synchronous>, transform_indices = @transform_7, window_bounds = array<i64: 1, 10>}, {pipeline_mode = #tpu.pipeline_mode<synchronous>, transform_indices = @transform_8, window_bounds = array<i64: 1, 10>}, {pipeline_mode = #tpu.pipeline_mode<synchronous>, transform_indices = @transform_9, window_bounds = array<i64: 1, 10>}, {pipeline_mode = #tpu.pipeline_mode<synchronous>, transform_indices = @transform_10, window_bounds = array<i64: 1, 10>}, {transform_indices = @transform_11, window_bounds = array<i64: 8, 70>}]} {
    %c8_i32 = arith.constant 8 : i32
    %0 = arith.muli %arg0, %c8_i32 : i32
    %c0 = arith.constant 0 : index
    %c0_0 = arith.constant 0 : index
    %1 = vector.load %arg6[%c0, %c0_0] : memref<8x1xf32, #tpu.memory_space<vmem>>, vector<8x1xf32>
    %c0_1 = arith.constant 0 : index
    %c0_2 = arith.constant 0 : index
    %2 = vector.load %arg13[%c0_1, %c0_2] : memref<1x10xf32, #tpu.memory_space<vmem>>, vector<1x10xf32>
    %3 = vector.broadcast %1 : vector<8x1xf32> to vector<8x10xf32>
    %4 = vector.broadcast %2 : vector<1x10xf32> to vector<8x10xf32>
    %5 = arith.mulf %3, %4 : vector<8x10xf32>
    %c0_3 = arith.constant 0 : index
    %c0_4 = arith.constant 0 : index
    %6 = vector.load %arg14[%c0_3, %c0_4] : memref<1x10xf32, #tpu.memory_space<vmem>>, vector<1x10xf32>
    %7 = vector.broadcast %6 : vector<1x10xf32> to vector<8x10xf32>
    %8 = arith.addf %5, %7 : vector<8x10xf32>
    %c0_5 = arith.constant 0 : index
    %c30 = arith.constant 30 : index
    %9 = vector.load %arg17[%c0_5, %c30] : memref<8x70xf32, #tpu.memory_space<vmem>>, vector<8x10xf32>
    tpu.vector_store %arg17[%c0_5, %c30], %8 {strides = array<i32>} : memref<8x70xf32, #tpu.memory_space<vmem>>, vector<8x10xf32>,
    %c0_6 = arith.constant 0 : index
    %c0_7 = arith.constant 0 : index
    %10 = vector.load %arg7[%c0_6, %c0_7] : memref<8x1xf32, #tpu.memory_space<vmem>>, vector<8x1xf32>
    %c0_8 = arith.constant 0 : index
    %c0_9 = arith.constant 0 : index
    %11 = vector.load %arg15[%c0_8, %c0_9] : memref<1x10xf32, #tpu.memory_space<vmem>>, vector<1x10xf32>
    %12 = vector.broadcast %10 : vector<8x1xf32> to vector<8x10xf32>
    %13 = vector.broadcast %11 : vector<1x10xf32> to vector<8x10xf32>
    %14 = arith.mulf %12, %13 : vector<8x10xf32>
    %c0_10 = arith.constant 0 : index
    %c0_11 = arith.constant 0 : index
    %15 = vector.load %arg16[%c0_10, %c0_11] : memref<1x10xf32, #tpu.memory_space<vmem>>, vector<1x10xf32>
    %16 = vector.broadcast %15 : vector<1x10xf32> to vector<8x10xf32>
    %17 = arith.addf %14, %16 : vector<8x10xf32>
    %c0_12 = arith.constant 0 : index
    %c50 = arith.constant 50 : index
    %18 = vector.load %arg17[%c0_12, %c50] : memref<8x70xf32, #tpu.memory_space<vmem>>, vector<8x10xf32>
    tpu.vector_store %arg17[%c0_12, %c50], %17 {strides = array<i32>} : memref<8x70xf32, #tpu.memory_space<vmem>>, vector<8x10xf32>,
    %c0_i32 = arith.constant 0 : i32
    %19 = arith.addi %0, %c0_i32 : i32
    %20 = arith.index_cast %19 : i32 to index
    %21 = memref.load %arg1[%20] : memref<16xi32, #tpu.memory_space<smem>>
    %22 = arith.index_cast %21 : i32 to index
    %c0_13 = arith.constant 0 : index
    %23 = vector.load %arg8[%22, %c0_13] : memref<32x10xf32, #tpu.memory_space<vmem>>, vector<1x10xf32>
    %c0_14 = arith.constant 0 : index
    %c0_15 = arith.constant 0 : index
    %24 = vector.load %arg17[%c0_14, %c0_15] : memref<8x70xf32, #tpu.memory_space<vmem>>, vector<1x10xf32>
    tpu.vector_store %arg17[%c0_14, %c0_15], %23 {strides = array<i32>} : memref<8x70xf32, #tpu.memory_space<vmem>>, vector<1x10xf32>,
    %c1_i32 = arith.constant 1 : i32
    %25 = arith.addi %0, %c1_i32 : i32
    %26 = arith.index_cast %25 : i32 to index
    %27 = memref.load %arg1[%26] : memref<16xi32, #tpu.memory_space<smem>>
    %28 = arith.index_cast %27 : i32 to index
    %c0_16 = arith.constant 0 : index
    %29 = vector.load %arg8[%28, %c0_16] : memref<32x10xf32, #tpu.memory_space<vmem>>, vector<1x10xf32>
    %c1 = arith.constant 1 : index
    %c0_17 = arith.constant 0 : index
    %30 = vector.load %arg17[%c1, %c0_17] : memref<8x70xf32, #tpu.memory_space<vmem>>, vector<1x10xf32>
    tpu.vector_store %arg17[%c1, %c0_17], %29 {strides = array<i32>} : memref<8x70xf32, #tpu.memory_space<vmem>>, vector<1x10xf32>,
    %c2_i32 = arith.constant 2 : i32
    %31 = arith.addi %0, %c2_i32 : i32
    %32 = arith.index_cast %31 : i32 to index
    %33 = memref.load %arg1[%32] : memref<16xi32, #tpu.memory_space<smem>>
    %34 = arith.index_cast %33 : i32 to index
    %c0_18 = arith.constant 0 : index
    %35 = vector.load %arg8[%34, %c0_18] : memref<32x10xf32, #tpu.memory_space<vmem>>, vector<1x10xf32>
    %c2 = arith.constant 2 : index
    %c0_19 = arith.constant 0 : index
    %36 = vector.load %arg17[%c2, %c0_19] : memref<8x70xf32, #tpu.memory_space<vmem>>, vector<1x10xf32>
    tpu.vector_store %arg17[%c2, %c0_19], %35 {strides = array<i32>} : memref<8x70xf32, #tpu.memory_space<vmem>>, vector<1x10xf32>,
    %c3_i32 = arith.constant 3 : i32
    %37 = arith.addi %0, %c3_i32 : i32
    %38 = arith.index_cast %37 : i32 to index
    %39 = memref.load %arg1[%38] : memref<16xi32, #tpu.memory_space<smem>>
    %40 = arith.index_cast %39 : i32 to index
    %c0_20 = arith.constant 0 : index
    %41 = vector.load %arg8[%40, %c0_20] : memref<32x10xf32, #tpu.memory_space<vmem>>, vector<1x10xf32>
    %c3 = arith.constant 3 : index
    %c0_21 = arith.constant 0 : index
    %42 = vector.load %arg17[%c3, %c0_21] : memref<8x70xf32, #tpu.memory_space<vmem>>, vector<1x10xf32>
    tpu.vector_store %arg17[%c3, %c0_21], %41 {strides = array<i32>} : memref<8x70xf32, #tpu.memory_space<vmem>>, vector<1x10xf32>,
    %c4_i32 = arith.constant 4 : i32
    %43 = arith.addi %0, %c4_i32 : i32
    %44 = arith.index_cast %43 : i32 to index
    %45 = memref.load %arg1[%44] : memref<16xi32, #tpu.memory_space<smem>>
    %46 = arith.index_cast %45 : i32 to index
    %c0_22 = arith.constant 0 : index
    %47 = vector.load %arg8[%46, %c0_22] : memref<32x10xf32, #tpu.memory_space<vmem>>, vector<1x10xf32>
    %c4 = arith.constant 4 : index
    %c0_23 = arith.constant 0 : index
    %48 = vector.load %arg17[%c4, %c0_23] : memref<8x70xf32, #tpu.memory_space<vmem>>, vector<1x10xf32>
    tpu.vector_store %arg17[%c4, %c0_23], %47 {strides = array<i32>} : memref<8x70xf32, #tpu.memory_space<vmem>>, vector<1x10xf32>,
    %c5_i32 = arith.constant 5 : i32
    %49 = arith.addi %0, %c5_i32 : i32
    %50 = arith.index_cast %49 : i32 to index
    %51 = memref.load %arg1[%50] : memref<16xi32, #tpu.memory_space<smem>>
    %52 = arith.index_cast %51 : i32 to index
    %c0_24 = arith.constant 0 : index
    %53 = vector.load %arg8[%52, %c0_24] : memref<32x10xf32, #tpu.memory_space<vmem>>, vector<1x10xf32>
    %c5 = arith.constant 5 : index
    %c0_25 = arith.constant 0 : index
    %54 = vector.load %arg17[%c5, %c0_25] : memref<8x70xf32, #tpu.memory_space<vmem>>, vector<1x10xf32>
    tpu.vector_store %arg17[%c5, %c0_25], %53 {strides = array<i32>} : memref<8x70xf32, #tpu.memory_space<vmem>>, vector<1x10xf32>,
    %c6_i32 = arith.constant 6 : i32
    %55 = arith.addi %0, %c6_i32 : i32
    %56 = arith.index_cast %55 : i32 to index
    %57 = memref.load %arg1[%56] : memref<16xi32, #tpu.memory_space<smem>>
    %58 = arith.index_cast %57 : i32 to index
    %c0_26 = arith.constant 0 : index
    %59 = vector.load %arg8[%58, %c0_26] : memref<32x10xf32, #tpu.memory_space<vmem>>, vector<1x10xf32>
    %c6 = arith.constant 6 : index
    %c0_27 = arith.constant 0 : index
    %60 = vector.load %arg17[%c6, %c0_27] : memref<8x70xf32, #tpu.memory_space<vmem>>, vector<1x10xf32>
    tpu.vector_store %arg17[%c6, %c0_27], %59 {strides = array<i32>} : memref<8x70xf32, #tpu.memory_space<vmem>>, vector<1x10xf32>,
    %c7_i32 = arith.constant 7 : i32
    %61 = arith.addi %0, %c7_i32 : i32
    %62 = arith.index_cast %61 : i32 to index
    %63 = memref.load %arg1[%62] : memref<16xi32, #tpu.memory_space<smem>>
    %64 = arith.index_cast %63 : i32 to index
    %c0_28 = arith.constant 0 : index
    %65 = vector.load %arg8[%64, %c0_28] : memref<32x10xf32, #tpu.memory_space<vmem>>, vector<1x10xf32>
    %c7 = arith.constant 7 : index
    %c0_29 = arith.constant 0 : index
    %66 = vector.load %arg17[%c7, %c0_29] : memref<8x70xf32, #tpu.memory_space<vmem>>, vector<1x10xf32>
    tpu.vector_store %arg17[%c7, %c0_29], %65 {strides = array<i32>} : memref<8x70xf32, #tpu.memory_space<vmem>>, vector<1x10xf32>,
    %c0_i32_30 = arith.constant 0 : i32
    %67 = arith.addi %0, %c0_i32_30 : i32
    %68 = arith.index_cast %67 : i32 to index
    %69 = memref.load %arg2[%68] : memref<16xi32, #tpu.memory_space<smem>>
    %70 = arith.index_cast %69 : i32 to index
    %c0_31 = arith.constant 0 : index
    %71 = vector.load %arg9[%70, %c0_31] : memref<48x10xf32, #tpu.memory_space<vmem>>, vector<1x10xf32>
    %c0_32 = arith.constant 0 : index
    %c10 = arith.constant 10 : index
    %72 = vector.load %arg17[%c0_32, %c10] : memref<8x70xf32, #tpu.memory_space<vmem>>, vector<1x10xf32>
    tpu.vector_store %arg17[%c0_32, %c10], %71 {strides = array<i32>} : memref<8x70xf32, #tpu.memory_space<vmem>>, vector<1x10xf32>,
    %c1_i32_33 = arith.constant 1 : i32
    %73 = arith.addi %0, %c1_i32_33 : i32
    %74 = arith.index_cast %73 : i32 to index
    %75 = memref.load %arg2[%74] : memref<16xi32, #tpu.memory_space<smem>>
    %76 = arith.index_cast %75 : i32 to index
    %c0_34 = arith.constant 0 : index
    %77 = vector.load %arg9[%76, %c0_34] : memref<48x10xf32, #tpu.memory_space<vmem>>, vector<1x10xf32>
    %c1_35 = arith.constant 1 : index
    %c10_36 = arith.constant 10 : index
    %78 = vector.load %arg17[%c1_35, %c10_36] : memref<8x70xf32, #tpu.memory_space<vmem>>, vector<1x10xf32>
    tpu.vector_store %arg17[%c1_35, %c10_36], %77 {strides = array<i32>} : memref<8x70xf32, #tpu.memory_space<vmem>>, vector<1x10xf32>,
    %c2_i32_37 = arith.constant 2 : i32
    %79 = arith.addi %0, %c2_i32_37 : i32
    %80 = arith.index_cast %79 : i32 to index
    %81 = memref.load %arg2[%80] : memref<16xi32, #tpu.memory_space<smem>>
    %82 = arith.index_cast %81 : i32 to index
    %c0_38 = arith.constant 0 : index
    %83 = vector.load %arg9[%82, %c0_38] : memref<48x10xf32, #tpu.memory_space<vmem>>, vector<1x10xf32>
    %c2_39 = arith.constant 2 : index
    %c10_40 = arith.constant 10 : index
    %84 = vector.load %arg17[%c2_39, %c10_40] : memref<8x70xf32, #tpu.memory_space<vmem>>, vector<1x10xf32>
    tpu.vector_store %arg17[%c2_39, %c10_40], %83 {strides = array<i32>} : memref<8x70xf32, #tpu.memory_space<vmem>>, vector<1x10xf32>,
    %c3_i32_41 = arith.constant 3 : i32
    %85 = arith.addi %0, %c3_i32_41 : i32
    %86 = arith.index_cast %85 : i32 to index
    %87 = memref.load %arg2[%86] : memref<16xi32, #tpu.memory_space<smem>>
    %88 = arith.index_cast %87 : i32 to index
    %c0_42 = arith.constant 0 : index
    %89 = vector.load %arg9[%88, %c0_42] : memref<48x10xf32, #tpu.memory_space<vmem>>, vector<1x10xf32>
    %c3_43 = arith.constant 3 : index
    %c10_44 = arith.constant 10 : index
    %90 = vector.load %arg17[%c3_43, %c10_44] : memref<8x70xf32, #tpu.memory_space<vmem>>, vector<1x10xf32>
    tpu.vector_store %arg17[%c3_43, %c10_44], %89 {strides = array<i32>} : memref<8x70xf32, #tpu.memory_space<vmem>>, vector<1x10xf32>,
    %c4_i32_45 = arith.constant 4 : i32
    %91 = arith.addi %0, %c4_i32_45 : i32
    %92 = arith.index_cast %91 : i32 to index
    %93 = memref.load %arg2[%92] : memref<16xi32, #tpu.memory_space<smem>>
    %94 = arith.index_cast %93 : i32 to index
    %c0_46 = arith.constant 0 : index
    %95 = vector.load %arg9[%94, %c0_46] : memref<48x10xf32, #tpu.memory_space<vmem>>, vector<1x10xf32>
    %c4_47 = arith.constant 4 : index
    %c10_48 = arith.constant 10 : index
    %96 = vector.load %arg17[%c4_47, %c10_48] : memref<8x70xf32, #tpu.memory_space<vmem>>, vector<1x10xf32>
    tpu.vector_store %arg17[%c4_47, %c10_48], %95 {strides = array<i32>} : memref<8x70xf32, #tpu.memory_space<vmem>>, vector<1x10xf32>,
    %c5_i32_49 = arith.constant 5 : i32
    %97 = arith.addi %0, %c5_i32_49 : i32
    %98 = arith.index_cast %97 : i32 to index
    %99 = memref.load %arg2[%98] : memref<16xi32, #tpu.memory_space<smem>>
    %100 = arith.index_cast %99 : i32 to index
    %c0_50 = arith.constant 0 : index
    %101 = vector.load %arg9[%100, %c0_50] : memref<48x10xf32, #tpu.memory_space<vmem>>, vector<1x10xf32>
    %c5_51 = arith.constant 5 : index
    %c10_52 = arith.constant 10 : index
    %102 = vector.load %arg17[%c5_51, %c10_52] : memref<8x70xf32, #tpu.memory_space<vmem>>, vector<1x10xf32>
    tpu.vector_store %arg17[%c5_51, %c10_52], %101 {strides = array<i32>} : memref<8x70xf32, #tpu.memory_space<vmem>>, vector<1x10xf32>,
    %c6_i32_53 = arith.constant 6 : i32
    %103 = arith.addi %0, %c6_i32_53 : i32
    %104 = arith.index_cast %103 : i32 to index
    %105 = memref.load %arg2[%104] : memref<16xi32, #tpu.memory_space<smem>>
    %106 = arith.index_cast %105 : i32 to index
    %c0_54 = arith.constant 0 : index
    %107 = vector.load %arg9[%106, %c0_54] : memref<48x10xf32, #tpu.memory_space<vmem>>, vector<1x10xf32>
    %c6_55 = arith.constant 6 : index
    %c10_56 = arith.constant 10 : index
    %108 = vector.load %arg17[%c6_55, %c10_56] : memref<8x70xf32, #tpu.memory_space<vmem>>, vector<1x10xf32>
    tpu.vector_store %arg17[%c6_55, %c10_56], %107 {strides = array<i32>} : memref<8x70xf32, #tpu.memory_space<vmem>>, vector<1x10xf32>,
    %c7_i32_57 = arith.constant 7 : i32
    %109 = arith.addi %0, %c7_i32_57 : i32
    %110 = arith.index_cast %109 : i32 to index
    %111 = memref.load %arg2[%110] : memref<16xi32, #tpu.memory_space<smem>>
    %112 = arith.index_cast %111 : i32 to index
    %c0_58 = arith.constant 0 : index
    %113 = vector.load %arg9[%112, %c0_58] : memref<48x10xf32, #tpu.memory_space<vmem>>, vector<1x10xf32>
    %c7_59 = arith.constant 7 : index
    %c10_60 = arith.constant 10 : index
    %114 = vector.load %arg17[%c7_59, %c10_60] : memref<8x70xf32, #tpu.memory_space<vmem>>, vector<1x10xf32>
    tpu.vector_store %arg17[%c7_59, %c10_60], %113 {strides = array<i32>} : memref<8x70xf32, #tpu.memory_space<vmem>>, vector<1x10xf32>,
    %c0_i32_61 = arith.constant 0 : i32
    %115 = arith.addi %0, %c0_i32_61 : i32
    %116 = arith.index_cast %115 : i32 to index
    %117 = memref.load %arg3[%116] : memref<16xi32, #tpu.memory_space<smem>>
    %118 = arith.index_cast %117 : i32 to index
    %c0_62 = arith.constant 0 : index
    %119 = vector.load %arg10[%118, %c0_62] : memref<16x10xf32, #tpu.memory_space<vmem>>, vector<1x10xf32>
    %c0_63 = arith.constant 0 : index
    %c20 = arith.constant 20 : index
    %120 = vector.load %arg17[%c0_63, %c20] : memref<8x70xf32, #tpu.memory_space<vmem>>, vector<1x10xf32>
    tpu.vector_store %arg17[%c0_63, %c20], %119 {strides = array<i32>} : memref<8x70xf32, #tpu.memory_space<vmem>>, vector<1x10xf32>,
    %c1_i32_64 = arith.constant 1 : i32
    %121 = arith.addi %0, %c1_i32_64 : i32
    %122 = arith.index_cast %121 : i32 to index
    %123 = memref.load %arg3[%122] : memref<16xi32, #tpu.memory_space<smem>>
    %124 = arith.index_cast %123 : i32 to index
    %c0_65 = arith.constant 0 : index
    %125 = vector.load %arg10[%124, %c0_65] : memref<16x10xf32, #tpu.memory_space<vmem>>, vector<1x10xf32>
    %c1_66 = arith.constant 1 : index
    %c20_67 = arith.constant 20 : index
    %126 = vector.load %arg17[%c1_66, %c20_67] : memref<8x70xf32, #tpu.memory_space<vmem>>, vector<1x10xf32>
    tpu.vector_store %arg17[%c1_66, %c20_67], %125 {strides = array<i32>} : memref<8x70xf32, #tpu.memory_space<vmem>>, vector<1x10xf32>,
    %c2_i32_68 = arith.constant 2 : i32
    %127 = arith.addi %0, %c2_i32_68 : i32
    %128 = arith.index_cast %127 : i32 to index
    %129 = memref.load %arg3[%128] : memref<16xi32, #tpu.memory_space<smem>>
    %130 = arith.index_cast %129 : i32 to index
    %c0_69 = arith.constant 0 : index
    %131 = vector.load %arg10[%130, %c0_69] : memref<16x10xf32, #tpu.memory_space<vmem>>, vector<1x10xf32>
    %c2_70 = arith.constant 2 : index
    %c20_71 = arith.constant 20 : index
    %132 = vector.load %arg17[%c2_70, %c20_71] : memref<8x70xf32, #tpu.memory_space<vmem>>, vector<1x10xf32>
    tpu.vector_store %arg17[%c2_70, %c20_71], %131 {strides = array<i32>} : memref<8x70xf32, #tpu.memory_space<vmem>>, vector<1x10xf32>,
    %c3_i32_72 = arith.constant 3 : i32
    %133 = arith.addi %0, %c3_i32_72 : i32
    %134 = arith.index_cast %133 : i32 to index
    %135 = memref.load %arg3[%134] : memref<16xi32, #tpu.memory_space<smem>>
    %136 = arith.index_cast %135 : i32 to index
    %c0_73 = arith.constant 0 : index
    %137 = vector.load %arg10[%136, %c0_73] : memref<16x10xf32, #tpu.memory_space<vmem>>, vector<1x10xf32>
    %c3_74 = arith.constant 3 : index
    %c20_75 = arith.constant 20 : index
    %138 = vector.load %arg17[%c3_74, %c20_75] : memref<8x70xf32, #tpu.memory_space<vmem>>, vector<1x10xf32>
    tpu.vector_store %arg17[%c3_74, %c20_75], %137 {strides = array<i32>} : memref<8x70xf32, #tpu.memory_space<vmem>>, vector<1x10xf32>,
    %c4_i32_76 = arith.constant 4 : i32
    %139 = arith.addi %0, %c4_i32_76 : i32
    %140 = arith.index_cast %139 : i32 to index
    %141 = memref.load %arg3[%140] : memref<16xi32, #tpu.memory_space<smem>>
    %142 = arith.index_cast %141 : i32 to index
    %c0_77 = arith.constant 0 : index
    %143 = vector.load %arg10[%142, %c0_77] : memref<16x10xf32, #tpu.memory_space<vmem>>, vector<1x10xf32>
    %c4_78 = arith.constant 4 : index
    %c20_79 = arith.constant 20 : index
    %144 = vector.load %arg17[%c4_78, %c20_79] : memref<8x70xf32, #tpu.memory_space<vmem>>, vector<1x10xf32>
    tpu.vector_store %arg17[%c4_78, %c20_79], %143 {strides = array<i32>} : memref<8x70xf32, #tpu.memory_space<vmem>>, vector<1x10xf32>,
    %c5_i32_80 = arith.constant 5 : i32
    %145 = arith.addi %0, %c5_i32_80 : i32
    %146 = arith.index_cast %145 : i32 to index
    %147 = memref.load %arg3[%146] : memref<16xi32, #tpu.memory_space<smem>>
    %148 = arith.index_cast %147 : i32 to index
    %c0_81 = arith.constant 0 : index
    %149 = vector.load %arg10[%148, %c0_81] : memref<16x10xf32, #tpu.memory_space<vmem>>, vector<1x10xf32>
    %c5_82 = arith.constant 5 : index
    %c20_83 = arith.constant 20 : index
    %150 = vector.load %arg17[%c5_82, %c20_83] : memref<8x70xf32, #tpu.memory_space<vmem>>, vector<1x10xf32>
    tpu.vector_store %arg17[%c5_82, %c20_83], %149 {strides = array<i32>} : memref<8x70xf32, #tpu.memory_space<vmem>>, vector<1x10xf32>,
    %c6_i32_84 = arith.constant 6 : i32
    %151 = arith.addi %0, %c6_i32_84 : i32
    %152 = arith.index_cast %151 : i32 to index
    %153 = memref.load %arg3[%152] : memref<16xi32, #tpu.memory_space<smem>>
    %154 = arith.index_cast %153 : i32 to index
    %c0_85 = arith.constant 0 : index
    %155 = vector.load %arg10[%154, %c0_85] : memref<16x10xf32, #tpu.memory_space<vmem>>, vector<1x10xf32>
    %c6_86 = arith.constant 6 : index
    %c20_87 = arith.constant 20 : index
    %156 = vector.load %arg17[%c6_86, %c20_87] : memref<8x70xf32, #tpu.memory_space<vmem>>, vector<1x10xf32>
    tpu.vector_store %arg17[%c6_86, %c20_87], %155 {strides = array<i32>} : memref<8x70xf32, #tpu.memory_space<vmem>>, vector<1x10xf32>,
    %c7_i32_88 = arith.constant 7 : i32
    %157 = arith.addi %0, %c7_i32_88 : i32
    %158 = arith.index_cast %157 : i32 to index
    %159 = memref.load %arg3[%158] : memref<16xi32, #tpu.memory_space<smem>>
    %160 = arith.index_cast %159 : i32 to index
    %c0_89 = arith.constant 0 : index
    %161 = vector.load %arg10[%160, %c0_89] : memref<16x10xf32, #tpu.memory_space<vmem>>, vector<1x10xf32>
    %c7_90 = arith.constant 7 : index
    %c20_91 = arith.constant 20 : index
    %162 = vector.load %arg17[%c7_90, %c20_91] : memref<8x70xf32, #tpu.memory_space<vmem>>, vector<1x10xf32>
    tpu.vector_store %arg17[%c7_90, %c20_91], %161 {strides = array<i32>} : memref<8x70xf32, #tpu.memory_space<vmem>>, vector<1x10xf32>,
    %c0_i32_92 = arith.constant 0 : i32
    %163 = arith.addi %0, %c0_i32_92 : i32
    %164 = arith.index_cast %163 : i32 to index
    %165 = memref.load %arg4[%164] : memref<16xi32, #tpu.memory_space<smem>>
    %166 = arith.index_cast %165 : i32 to index
    %c0_93 = arith.constant 0 : index
    %167 = vector.load %arg11[%166, %c0_93] : memref<24x10xf32, #tpu.memory_space<vmem>>, vector<1x10xf32>
    %c0_94 = arith.constant 0 : index
    %c40 = arith.constant 40 : index
    %168 = vector.load %arg17[%c0_94, %c40] : memref<8x70xf32, #tpu.memory_space<vmem>>, vector<1x10xf32>
    tpu.vector_store %arg17[%c0_94, %c40], %167 {strides = array<i32>} : memref<8x70xf32, #tpu.memory_space<vmem>>, vector<1x10xf32>,
    %c1_i32_95 = arith.constant 1 : i32
    %169 = arith.addi %0, %c1_i32_95 : i32
    %170 = arith.index_cast %169 : i32 to index
    %171 = memref.load %arg4[%170] : memref<16xi32, #tpu.memory_space<smem>>
    %172 = arith.index_cast %171 : i32 to index
    %c0_96 = arith.constant 0 : index
    %173 = vector.load %arg11[%172, %c0_96] : memref<24x10xf32, #tpu.memory_space<vmem>>, vector<1x10xf32>
    %c1_97 = arith.constant 1 : index
    %c40_98 = arith.constant 40 : index
    %174 = vector.load %arg17[%c1_97, %c40_98] : memref<8x70xf32, #tpu.memory_space<vmem>>, vector<1x10xf32>
    tpu.vector_store %arg17[%c1_97, %c40_98], %173 {strides = array<i32>} : memref<8x70xf32, #tpu.memory_space<vmem>>, vector<1x10xf32>,
    %c2_i32_99 = arith.constant 2 : i32
    %175 = arith.addi %0, %c2_i32_99 : i32
    %176 = arith.index_cast %175 : i32 to index
    %177 = memref.load %arg4[%176] : memref<16xi32, #tpu.memory_space<smem>>
    %178 = arith.index_cast %177 : i32 to index
    %c0_100 = arith.constant 0 : index
    %179 = vector.load %arg11[%178, %c0_100] : memref<24x10xf32, #tpu.memory_space<vmem>>, vector<1x10xf32>
    %c2_101 = arith.constant 2 : index
    %c40_102 = arith.constant 40 : index
    %180 = vector.load %arg17[%c2_101, %c40_102] : memref<8x70xf32, #tpu.memory_space<vmem>>, vector<1x10xf32>
    tpu.vector_store %arg17[%c2_101, %c40_102], %179 {strides = array<i32>} : memref<8x70xf32, #tpu.memory_space<vmem>>, vector<1x10xf32>,
    %c3_i32_103 = arith.constant 3 : i32
    %181 = arith.addi %0, %c3_i32_103 : i32
    %182 = arith.index_cast %181 : i32 to index
    %183 = memref.load %arg4[%182] : memref<16xi32, #tpu.memory_space<smem>>
    %184 = arith.index_cast %183 : i32 to index
    %c0_104 = arith.constant 0 : index
    %185 = vector.load %arg11[%184, %c0_104] : memref<24x10xf32, #tpu.memory_space<vmem>>, vector<1x10xf32>
    %c3_105 = arith.constant 3 : index
    %c40_106 = arith.constant 40 : index
    %186 = vector.load %arg17[%c3_105, %c40_106] : memref<8x70xf32, #tpu.memory_space<vmem>>, vector<1x10xf32>
    tpu.vector_store %arg17[%c3_105, %c40_106], %185 {strides = array<i32>} : memref<8x70xf32, #tpu.memory_space<vmem>>, vector<1x10xf32>,
    %c4_i32_107 = arith.constant 4 : i32
    %187 = arith.addi %0, %c4_i32_107 : i32
    %188 = arith.index_cast %187 : i32 to index
    %189 = memref.load %arg4[%188] : memref<16xi32, #tpu.memory_space<smem>>
    %190 = arith.index_cast %189 : i32 to index
    %c0_108 = arith.constant 0 : index
    %191 = vector.load %arg11[%190, %c0_108] : memref<24x10xf32, #tpu.memory_space<vmem>>, vector<1x10xf32>
    %c4_109 = arith.constant 4 : index
    %c40_110 = arith.constant 40 : index
    %192 = vector.load %arg17[%c4_109, %c40_110] : memref<8x70xf32, #tpu.memory_space<vmem>>, vector<1x10xf32>
    tpu.vector_store %arg17[%c4_109, %c40_110], %191 {strides = array<i32>} : memref<8x70xf32, #tpu.memory_space<vmem>>, vector<1x10xf32>,
    %c5_i32_111 = arith.constant 5 : i32
    %193 = arith.addi %0, %c5_i32_111 : i32
    %194 = arith.index_cast %193 : i32 to index
    %195 = memref.load %arg4[%194] : memref<16xi32, #tpu.memory_space<smem>>
    %196 = arith.index_cast %195 : i32 to index
    %c0_112 = arith.constant 0 : index
    %197 = vector.load %arg11[%196, %c0_112] : memref<24x10xf32, #tpu.memory_space<vmem>>, vector<1x10xf32>
    %c5_113 = arith.constant 5 : index
    %c40_114 = arith.constant 40 : index
    %198 = vector.load %arg17[%c5_113, %c40_114] : memref<8x70xf32, #tpu.memory_space<vmem>>, vector<1x10xf32>
    tpu.vector_store %arg17[%c5_113, %c40_114], %197 {strides = array<i32>} : memref<8x70xf32, #tpu.memory_space<vmem>>, vector<1x10xf32>,
    %c6_i32_115 = arith.constant 6 : i32
    %199 = arith.addi %0, %c6_i32_115 : i32
    %200 = arith.index_cast %199 : i32 to index
    %201 = memref.load %arg4[%200] : memref<16xi32, #tpu.memory_space<smem>>
    %202 = arith.index_cast %201 : i32 to index
    %c0_116 = arith.constant 0 : index
    %203 = vector.load %arg11[%202, %c0_116] : memref<24x10xf32, #tpu.memory_space<vmem>>, vector<1x10xf32>
    %c6_117 = arith.constant 6 : index
    %c40_118 = arith.constant 40 : index
    %204 = vector.load %arg17[%c6_117, %c40_118] : memref<8x70xf32, #tpu.memory_space<vmem>>, vector<1x10xf32>
    tpu.vector_store %arg17[%c6_117, %c40_118], %203 {strides = array<i32>} : memref<8x70xf32, #tpu.memory_space<vmem>>, vector<1x10xf32>,
    %c7_i32_119 = arith.constant 7 : i32
    %205 = arith.addi %0, %c7_i32_119 : i32
    %206 = arith.index_cast %205 : i32 to index
    %207 = memref.load %arg4[%206] : memref<16xi32, #tpu.memory_space<smem>>
    %208 = arith.index_cast %207 : i32 to index
    %c0_120 = arith.constant 0 : index
    %209 = vector.load %arg11[%208, %c0_120] : memref<24x10xf32, #tpu.memory_space<vmem>>, vector<1x10xf32>
    %c7_121 = arith.constant 7 : index
    %c40_122 = arith.constant 40 : index
    %210 = vector.load %arg17[%c7_121, %c40_122] : memref<8x70xf32, #tpu.memory_space<vmem>>, vector<1x10xf32>
    tpu.vector_store %arg17[%c7_121, %c40_122], %209 {strides = array<i32>} : memref<8x70xf32, #tpu.memory_space<vmem>>, vector<1x10xf32>,
    %c0_i32_123 = arith.constant 0 : i32
    %211 = arith.addi %0, %c0_i32_123 : i32
    %212 = arith.index_cast %211 : i32 to index
    %213 = memref.load %arg5[%212] : memref<16xi32, #tpu.memory_space<smem>>
    %214 = arith.index_cast %213 : i32 to index
    %c0_124 = arith.constant 0 : index
    %215 = vector.load %arg12[%214, %c0_124] : memref<12x10xf32, #tpu.memory_space<vmem>>, vector<1x10xf32>
    %c0_125 = arith.constant 0 : index
    %c60 = arith.constant 60 : index
    %216 = vector.load %arg17[%c0_125, %c60] : memref<8x70xf32, #tpu.memory_space<vmem>>, vector<1x10xf32>
    tpu.vector_store %arg17[%c0_125, %c60], %215 {strides = array<i32>} : memref<8x70xf32, #tpu.memory_space<vmem>>, vector<1x10xf32>,
    %c1_i32_126 = arith.constant 1 : i32
    %217 = arith.addi %0, %c1_i32_126 : i32
    %218 = arith.index_cast %217 : i32 to index
    %219 = memref.load %arg5[%218] : memref<16xi32, #tpu.memory_space<smem>>
    %220 = arith.index_cast %219 : i32 to index
    %c0_127 = arith.constant 0 : index
    %221 = vector.load %arg12[%220, %c0_127] : memref<12x10xf32, #tpu.memory_space<vmem>>, vector<1x10xf32>
    %c1_128 = arith.constant 1 : index
    %c60_129 = arith.constant 60 : index
    %222 = vector.load %arg17[%c1_128, %c60_129] : memref<8x70xf32, #tpu.memory_space<vmem>>, vector<1x10xf32>
    tpu.vector_store %arg17[%c1_128, %c60_129], %221 {strides = array<i32>} : memref<8x70xf32, #tpu.memory_space<vmem>>, vector<1x10xf32>,
    %c2_i32_130 = arith.constant 2 : i32
    %223 = arith.addi %0, %c2_i32_130 : i32
    %224 = arith.index_cast %223 : i32 to index
    %225 = memref.load %arg5[%224] : memref<16xi32, #tpu.memory_space<smem>>
    %226 = arith.index_cast %225 : i32 to index
    %c0_131 = arith.constant 0 : index
    %227 = vector.load %arg12[%226, %c0_131] : memref<12x10xf32, #tpu.memory_space<vmem>>, vector<1x10xf32>
    %c2_132 = arith.constant 2 : index
    %c60_133 = arith.constant 60 : index
    %228 = vector.load %arg17[%c2_132, %c60_133] : memref<8x70xf32, #tpu.memory_space<vmem>>, vector<1x10xf32>
    tpu.vector_store %arg17[%c2_132, %c60_133], %227 {strides = array<i32>} : memref<8x70xf32, #tpu.memory_space<vmem>>, vector<1x10xf32>,
    %c3_i32_134 = arith.constant 3 : i32
    %229 = arith.addi %0, %c3_i32_134 : i32
    %230 = arith.index_cast %229 : i32 to index
    %231 = memref.load %arg5[%230] : memref<16xi32, #tpu.memory_space<smem>>
    %232 = arith.index_cast %231 : i32 to index
    %c0_135 = arith.constant 0 : index
    %233 = vector.load %arg12[%232, %c0_135] : memref<12x10xf32, #tpu.memory_space<vmem>>, vector<1x10xf32>
    %c3_136 = arith.constant 3 : index
    %c60_137 = arith.constant 60 : index
    %234 = vector.load %arg17[%c3_136, %c60_137] : memref<8x70xf32, #tpu.memory_space<vmem>>, vector<1x10xf32>
    tpu.vector_store %arg17[%c3_136, %c60_137], %233 {strides = array<i32>} : memref<8x70xf32, #tpu.memory_space<vmem>>, vector<1x10xf32>,
    %c4_i32_138 = arith.constant 4 : i32
    %235 = arith.addi %0, %c4_i32_138 : i32
    %236 = arith.index_cast %235 : i32 to index
    %237 = memref.load %arg5[%236] : memref<16xi32, #tpu.memory_space<smem>>
    %238 = arith.index_cast %237 : i32 to index
    %c0_139 = arith.constant 0 : index
    %239 = vector.load %arg12[%238, %c0_139] : memref<12x10xf32, #tpu.memory_space<vmem>>, vector<1x10xf32>
    %c4_140 = arith.constant 4 : index
    %c60_141 = arith.constant 60 : index
    %240 = vector.load %arg17[%c4_140, %c60_141] : memref<8x70xf32, #tpu.memory_space<vmem>>, vector<1x10xf32>
    tpu.vector_store %arg17[%c4_140, %c60_141], %239 {strides = array<i32>} : memref<8x70xf32, #tpu.memory_space<vmem>>, vector<1x10xf32>,
    %c5_i32_142 = arith.constant 5 : i32
    %241 = arith.addi %0, %c5_i32_142 : i32
    %242 = arith.index_cast %241 : i32 to index
    %243 = memref.load %arg5[%242] : memref<16xi32, #tpu.memory_space<smem>>
    %244 = arith.index_cast %243 : i32 to index
    %c0_143 = arith.constant 0 : index
    %245 = vector.load %arg12[%244, %c0_143] : memref<12x10xf32, #tpu.memory_space<vmem>>, vector<1x10xf32>
    %c5_144 = arith.constant 5 : index
    %c60_145 = arith.constant 60 : index
    %246 = vector.load %arg17[%c5_144, %c60_145] : memref<8x70xf32, #tpu.memory_space<vmem>>, vector<1x10xf32>
    tpu.vector_store %arg17[%c5_144, %c60_145], %245 {strides = array<i32>} : memref<8x70xf32, #tpu.memory_space<vmem>>, vector<1x10xf32>,
    %c6_i32_146 = arith.constant 6 : i32
    %247 = arith.addi %0, %c6_i32_146 : i32
    %248 = arith.index_cast %247 : i32 to index
    %249 = memref.load %arg5[%248] : memref<16xi32, #tpu.memory_space<smem>>
    %250 = arith.index_cast %249 : i32 to index
    %c0_147 = arith.constant 0 : index
    %251 = vector.load %arg12[%250, %c0_147] : memref<12x10xf32, #tpu.memory_space<vmem>>, vector<1x10xf32>
    %c6_148 = arith.constant 6 : index
    %c60_149 = arith.constant 60 : index
    %252 = vector.load %arg17[%c6_148, %c60_149] : memref<8x70xf32, #tpu.memory_space<vmem>>, vector<1x10xf32>
    tpu.vector_store %arg17[%c6_148, %c60_149], %251 {strides = array<i32>} : memref<8x70xf32, #tpu.memory_space<vmem>>, vector<1x10xf32>,
    %c7_i32_150 = arith.constant 7 : i32
    %253 = arith.addi %0, %c7_i32_150 : i32
    %254 = arith.index_cast %253 : i32 to index
    %255 = memref.load %arg5[%254] : memref<16xi32, #tpu.memory_space<smem>>
    %256 = arith.index_cast %255 : i32 to index
    %c0_151 = arith.constant 0 : index
    %257 = vector.load %arg12[%256, %c0_151] : memref<12x10xf32, #tpu.memory_space<vmem>>, vector<1x10xf32>
    %c7_152 = arith.constant 7 : index
    %c60_153 = arith.constant 60 : index
    %258 = vector.load %arg17[%c7_152, %c60_153] : memref<8x70xf32, #tpu.memory_space<vmem>>, vector<1x10xf32>
    tpu.vector_store %arg17[%c7_152, %c60_153], %257 {strides = array<i32>} : memref<8x70xf32, #tpu.memory_space<vmem>>, vector<1x10xf32>,
    return
  }
  func.func @transform_0(%arg0: i32, %arg1: memref<16xi32, #tpu.memory_space<smem>>, %arg2: memref<16xi32, #tpu.memory_space<smem>>, %arg3: memref<16xi32, #tpu.memory_space<smem>>, %arg4: memref<16xi32, #tpu.memory_space<smem>>, %arg5: memref<16xi32, #tpu.memory_space<smem>>) -> (i32, i32) {
    %c0_i32 = arith.constant 0 : i32
    %c0_i32_0 = arith.constant 0 : i32
    return %arg0, %c0_i32 : i32, i32
  }
  func.func @transform_1(%arg0: i32, %arg1: memref<16xi32, #tpu.memory_space<smem>>, %arg2: memref<16xi32, #tpu.memory_space<smem>>, %arg3: memref<16xi32, #tpu.memory_space<smem>>, %arg4: memref<16xi32, #tpu.memory_space<smem>>, %arg5: memref<16xi32, #tpu.memory_space<smem>>) -> (i32, i32) {
    %c0_i32 = arith.constant 0 : i32
    %c0_i32_0 = arith.constant 0 : i32
    return %arg0, %c0_i32 : i32, i32
  }
  func.func @transform_2(%arg0: i32, %arg1: memref<16xi32, #tpu.memory_space<smem>>, %arg2: memref<16xi32, #tpu.memory_space<smem>>, %arg3: memref<16xi32, #tpu.memory_space<smem>>, %arg4: memref<16xi32, #tpu.memory_space<smem>>, %arg5: memref<16xi32, #tpu.memory_space<smem>>) -> (i32, i32) {
    %c0_i32 = arith.constant 0 : i32
    %c0_i32_0 = arith.constant 0 : i32
    %c0_i32_1 = arith.constant 0 : i32
    return %c0_i32, %c0_i32_0 : i32, i32
  }
  func.func @transform_3(%arg0: i32, %arg1: memref<16xi32, #tpu.memory_space<smem>>, %arg2: memref<16xi32, #tpu.memory_space<smem>>, %arg3: memref<16xi32, #tpu.memory_space<smem>>, %arg4: memref<16xi32, #tpu.memory_space<smem>>, %arg5: memref<16xi32, #tpu.memory_space<smem>>) -> (i32, i32) {
    %c0_i32 = arith.constant 0 : i32
    %c0_i32_0 = arith.constant 0 : i32
    %c0_i32_1 = arith.constant 0 : i32
    return %c0_i32, %c0_i32_0 : i32, i32
  }
  func.func @transform_4(%arg0: i32, %arg1: memref<16xi32, #tpu.memory_space<smem>>, %arg2: memref<16xi32, #tpu.memory_space<smem>>, %arg3: memref<16xi32, #tpu.memory_space<smem>>, %arg4: memref<16xi32, #tpu.memory_space<smem>>, %arg5: memref<16xi32, #tpu.memory_space<smem>>) -> (i32, i32) {
    %c0_i32 = arith.constant 0 : i32
    %c0_i32_0 = arith.constant 0 : i32
    %c0_i32_1 = arith.constant 0 : i32
    return %c0_i32, %c0_i32_0 : i32, i32
  }
  func.func @transform_5(%arg0: i32, %arg1: memref<16xi32, #tpu.memory_space<smem>>, %arg2: memref<16xi32, #tpu.memory_space<smem>>, %arg3: memref<16xi32, #tpu.memory_space<smem>>, %arg4: memref<16xi32, #tpu.memory_space<smem>>, %arg5: memref<16xi32, #tpu.memory_space<smem>>) -> (i32, i32) {
    %c0_i32 = arith.constant 0 : i32
    %c0_i32_0 = arith.constant 0 : i32
    %c0_i32_1 = arith.constant 0 : i32
    return %c0_i32, %c0_i32_0 : i32, i32
  }
  func.func @transform_6(%arg0: i32, %arg1: memref<16xi32, #tpu.memory_space<smem>>, %arg2: memref<16xi32, #tpu.memory_space<smem>>, %arg3: memref<16xi32, #tpu.memory_space<smem>>, %arg4: memref<16xi32, #tpu.memory_space<smem>>, %arg5: memref<16xi32, #tpu.memory_space<smem>>) -> (i32, i32) {
    %c0_i32 = arith.constant 0 : i32
    %c0_i32_0 = arith.constant 0 : i32
    %c0_i32_1 = arith.constant 0 : i32
    return %c0_i32, %c0_i32_0 : i32, i32
  }
  func.func @transform_7(%arg0: i32, %arg1: memref<16xi32, #tpu.memory_space<smem>>, %arg2: memref<16xi32, #tpu.memory_space<smem>>, %arg3: memref<16xi32, #tpu.memory_space<smem>>, %arg4: memref<16xi32, #tpu.memory_space<smem>>, %arg5: memref<16xi32, #tpu.memory_space<smem>>) -> (i32, i32) {
    %c0_i32 = arith.constant 0 : i32
    %c0_i32_0 = arith.constant 0 : i32
    %c0_i32_1 = arith.constant 0 : i32
    return %c0_i32, %c0_i32_0 : i32, i32
  }
  func.func @transform_8(%arg0: i32, %arg1: memref<16xi32, #tpu.memory_space<smem>>, %arg2: memref<16xi32, #tpu.memory_space<smem>>, %arg3: memref<16xi32, #tpu.memory_space<smem>>, %arg4: memref<16xi32, #tpu.memory_space<smem>>, %arg5: memref<16xi32, #tpu.memory_space<smem>>) -> (i32, i32) {
    %c0_i32 = arith.constant 0 : i32
    %c0_i32_0 = arith.constant 0 : i32
    %c0_i32_1 = arith.constant 0 : i32
    return %c0_i32, %c0_i32_0 : i32, i32
  }
  func.func @transform_9(%arg0: i32, %arg1: memref<16xi32, #tpu.memory_space<smem>>, %arg2: memref<16xi32, #tpu.memory_space<smem>>, %arg3: memref<16xi32, #tpu.memory_space<smem>>, %arg4: memref<16xi32, #tpu.memory_space<smem>>, %arg5: memref<16xi32, #tpu.memory_space<smem>>) -> (i32, i32) {
    %c0_i32 = arith.constant 0 : i32
    %c0_i32_0 = arith.constant 0 : i32
    %c0_i32_1 = arith.constant 0 : i32
    return %c0_i32, %c0_i32_0 : i32, i32
  }
  func.func @transform_10(%arg0: i32, %arg1: memref<16xi32, #tpu.memory_space<smem>>, %arg2: memref<16xi32, #tpu.memory_space<smem>>, %arg3: memref<16xi32, #tpu.memory_space<smem>>, %arg4: memref<16xi32, #tpu.memory_space<smem>>, %arg5: memref<16xi32, #tpu.memory_space<smem>>) -> (i32, i32) {
    %c0_i32 = arith.constant 0 : i32
    %c0_i32_0 = arith.constant 0 : i32
    %c0_i32_1 = arith.constant 0 : i32
    return %c0_i32, %c0_i32_0 : i32, i32
  }
  func.func @transform_11(%arg0: i32, %arg1: memref<16xi32, #tpu.memory_space<smem>>, %arg2: memref<16xi32, #tpu.memory_space<smem>>, %arg3: memref<16xi32, #tpu.memory_space<smem>>, %arg4: memref<16xi32, #tpu.memory_space<smem>>, %arg5: memref<16xi32, #tpu.memory_space<smem>>) -> (i32, i32) {
    %c0_i32 = arith.constant 0 : i32
    %c0_i32_0 = arith.constant 0 : i32
    return %arg0, %c0_i32 : i32, i32
  }
}

</mosaic_0001>

<bundles_post_ra>
// kernel: tpu_custom_call.1
= control target key start
LH: loop header
LB: loop body
LE: loop exit
PB: predicated region body
PF: predicated region fallthrough
CT: control target
= control target key end

     0   :  { %s1099_s27 = smov [#allocation3]   ;;  %s1100_s28 = smov [#allocation4]   ;;  %s1694_s0 = inlined_call_operand.vmem [shape: s32[16], index: 0, kind: input, shape index: {}]   ;;  %s1695_s5 = inlined_call_operand.vmem [shape: f32[16,1], index: 5, kind: input, shape index: {}]   ;;  %s1696_s6 = inlined_call_operand.vmem [shape: f32[16,1], index: 6, kind: input, shape index: {}]   ;;  %s1697_s7 = inlined_call_operand.vmem [shape: f32[32,10], index: 7, kind: input, shape index: {}]   ;;  %s1698_s8 = inlined_call_operand.vmem [shape: f32[48,10], index: 8, kind: input, shape index: {}]   ;;  %s1699_s9 = inlined_call_operand.vmem [shape: f32[16,10], index: 9, kind: input, shape index: {}]   ;;  %s1700_s10 = inlined_call_operand.vmem [shape: f32[24,10], index: 10, kind: input, shape index: {}]   ;;  %s1701_s11 = inlined_call_operand.vmem [shape: f32[12,10], index: 11, kind: input, shape index: {}]   ;;  %s1702_s12 = inlined_call_operand.vmem [shape: f32[1,10], index: 12, kind: input, shape index: {}]   ;;  %s1703_s13 = inlined_call_operand.vmem [shape: f32[1,10], index: 13, kind: input, shape index: {}]   ;;  %s1704_s14 = inlined_call_operand.vmem [shape: f32[1,10], index: 14, kind: input, shape index: {}]   ;;  %s1705_s15 = inlined_call_operand.vmem [shape: f32[1,10], index: 15, kind: input, shape index: {}]   ;;  %s1706_s16 = inlined_call_operand.hbm [shape: f32[16,70], index: 16, kind: output, shape index: {}]   ;;  %s1707_s1 = inlined_call_operand.vmem [shape: s32[16], index: 1, kind: input, shape index: {}]   ;;  %s1708_s2 = inlined_call_operand.vmem [shape: s32[16], index: 2, kind: input, shape index: {}]   ;;  %s1709_s3 = inlined_call_operand.vmem [shape: s32[16], index: 3, kind: input, shape index: {}]   ;;  %s1710_s4 = inlined_call_operand.vmem [shape: s32[16], index: 4, kind: input, shape index: {}]  }
   0x1   :  { %1726 = sst [smem:[#allocation20_spill]] %s1694_s0  ;;  %s27_s26 = sshll.u32 %s1707_s1, 4  ;;  %s28_s26 = int_to_ptr.vmem [resolvable:$true] %s27_s26 }
   0x2   :  { %1727 = sst [smem:[#allocation21_spill]] %s1695_s5  ;;  %s32_s0 = sshll.u32 %s1708_s2, 4  ;;  %s33_s0 = int_to_ptr.vmem [resolvable:$true] %s32_s0 }
   0x3   :  { %1728 = sst [smem:[#allocation22_spill]] %s1696_s6  ;;  %s37_s19 = sshll.u32 %s1709_s3, 4  ;;  %s38_s19 = int_to_ptr.vmem [resolvable:$true] %s37_s19 }
   0x4   :  { %1729 = sst [smem:[#allocation23_spill]] %s1697_s7  ;;  %s1101_s20 = smov [#allocation5]  }
   0x5   :  { %1730 = sst [smem:[#allocation24_spill]] %s1698_s8  ;;  %s1102_s21 = smov [#allocation6]  }
   0x6   :  { %1731 = sst [smem:[#allocation25_spill]] %s1703_s13 }
   0x7   :  { %1732 = sst [smem:[#allocation26_spill]] %s1705_s15 }
   0x8   :  { %1733 = sst [smem:[#allocation27_spill]] %s1706_s16 }
   0x9   :  { %s1734_s23 = sld [smem:[#allocation20_spill]] }
   0xf   :  { %s22_s7 = sshll.u32 %s1734_s23, 4  ;;  %s1103_s23 = smov [#allocation7]   ;;  %s23_s7 = int_to_ptr.vmem [resolvable:$true] %s22_s7 }
  0x10   :  { %25 = dma.vmem_to_smem %s23_s7, 16, %s1099_s27, [#allocation2] }
  0x11   :  { %30 = dma.vmem_to_smem %s28_s26, 16, %s1100_s28, [#allocation2] }
  0x12   :  { %35 = dma.vmem_to_smem %s33_s0, 16, %s1101_s20, [#allocation2] }
  0x13   :  { %40 = dma.vmem_to_smem %s38_s19, 16, %s1102_s21, [#allocation2] }
  0x14   :  { %s42_s7 = sshll.u32 %s1710_s4, 4  ;;  %s43_s7 = int_to_ptr.vmem [resolvable:$true] %s42_s7 }
  0x15   :  { %45 = dma.vmem_to_smem %s43_s7, 16, %s1103_s23, [#allocation2] }
  0x16   :  { %1077 = dma.done.wait [#allocation2], 80 }
  0x17   :  { %1078 = vsyncadd [#allocation2], 4294967216 }
  0x18   :  { %48 = sfence }
  0x19   :  { %49 = vsyncpa [#allocation9], 0 }
  0x1a   :  { %51 = vsyncpa [#allocation9 + $0x1], 0  ;;  %s1211_s2 = smov 0   ;;  %s1213_s3 = smov 0  }
  0x1b   :  { %s1215_s24 = smov 0   ;;  %s1217_s25 = smov 0  }
  0x1c LB: > { %1735 = sst [smem:[#allocation12_spill]] %s1085_s2  ;;  %s903_s4 = sadd.s32 4294967295, %s1097_s25   ;;  %s1097_s25 = sphi %s1217_s25, %s1759_s25   ;;  %s1093_s24 = sphi %s1215_s24, %s1762_s24   ;;  %s1089_s3 = sphi %s1213_s3, %s1761_s3   ;;  %s1085_s2 = sphi %s1211_s2, %s1760_s2  }
  0x1d   : > { %1736 = sst [smem:[#allocation13_spill]] %s1089_s3  ;;  %s904_s26 = sadd.s32 4294967294, %s1097_s25  }
  0x1e   : > { %1737 = sst [smem:[#allocation14_spill]] %s1093_s24  ;;  %s1234_s27 = sadd.s32 1, %s1097_s25  }
  0x1f   : > { %1738 = sst [smem:[#allocation15_spill]] %s1097_s25  ;;  %s305_s28 = sadd.s32 1, %s1093_s24 }
  0x20   : > { %1739 = sst [smem:[#allocation16_spill]] %s1234_s27  ;;  %s302_s29 = ssub.s32 %s1097_s25, %s1234_s27 }
  0x21   : > { %p315_p0 = scmp.ne.s32.totalorder %s1093_s24, %s1089_s3  ;;  %p303_p1 = scmp.eq.s32.totalorder %s302_s29, 0 }
  0x22   : > { %p316_p2 = scmp.eq.s32.totalorder %s903_s4, 1  ;;  %p321_p3 = scmp.ne.s32.totalorder %s1089_s3, %s1085_s2 }
  0x23   : > { %p322_p4 = scmp.eq.s32.totalorder %s904_s26, 1  ;;  %p907_p7 = scmp.ge.s32.totalorder %s1097_s25, 1 }
  0x24   : > { %s1244_s30 = scalar_select %p303_p1, %s1093_s24, %s305_s28  }
  0x25   : > { %p1246_p5 = por %p316_p2, %p315_p0  ;;  %p1250_p6 = por %p322_p4, %p321_p3 }
  0x26   : > { %1740 = sst [smem:[#allocation17_spill]] %s1244_s30  ;;  %p381_p8 = scmp.lt.s32.totalorder %s1097_s25, 3 }
  0x27   : > { %s1741_s0 = scalar_select %p1246_p5, 1, 0 }
  0x28   : > { %s1743_s17 = scalar_select %p1250_p6, 1, 0 }
  0x29   : > { %1742 = sst [smem:[#allocation18_spill]] %s1741_s0  ;;  %p382_p9 = pnand %p907_p7, %p381_p8 }
  0x2a   : > { %1744 = sst [smem:[#allocation19_spill]] %s1743_s17  ;;  %p424_p10 = scmp.lt.s32.totalorder (!%p382_p9), %s903_s4, 1 }
  0x2b   : > { %385 = sbr.rel (%p382_p9) target bundleno = 333 (0x14d), region = 64  ;;  %s1256_s18 = sshll.u32 (!%p382_p9), %s903_s4, 3 }
  0x2c   : > { %s1259_s19 = sadd.s32 (!%p382_p9), 3, %s1256_s18  ;;  %s1262_s20 = sadd.s32 (!%p382_p9), 2, %s1256_s18 }
  0x2d   : > { %s542_s1 = sld [smem:[#allocation4 + %s1259_s19]] (!%p382_p9)  ;;  %s1272_s30 = sadd.s32 (!%p382_p9), 6, %s1256_s18 }
  0x2e   : > { %s1745_s6 = sld [smem:[#allocation22_spill]] (!%p382_p9)  ;;  %s1276_s27 = sadd.s32 (!%p382_p9), 5, %s1256_s18 }
  0x2f   : > { %s1746_s5 = sld [smem:[#allocation21_spill]] (!%p382_p9)  ;;  %s1306_s3 = sadd.s32 (!%p382_p9), 4, %s1256_s18 }
  0x30   : > { %v1104_v0 = vmov 0   ;;  %s1764_s4 = smov (!%p424_p10, %s903_s4), 1  ;;  %s534_s24 = sld [smem:[#allocation4 + %s1262_s20]]  ;;  %v969_v32 = vld [vmem:[%s1704_s14] ss:$0 sm:$0xff]  ;;  %vm453_vm0 = vcmask 326896  }
  0x31   : > { %968 = vset.pattern.permute.xlu1 %v1104_v0  ;;  %967 = vset.pattern.permute.xlu0 %v1104_v0  ;;  %s909_s21 = sshll.u32 %s1764_s4, 3  ;;  %s566_s4 = sld [smem:[#allocation4 + %s1272_s30]]  ;;  %v971_v33 = vld [vmem:[%s1702_s12] ss:$0 sm:$0xff]  ;;  %vm475_vm1 = vcmask 490896   ;;  %vm480_vm2 = vcmask 73728  }
  0x32   : > { %s1747_s8 = sld [smem:[#allocation24_spill]]  ;;  %s1723_s0 = smov 20   ;;  %vm524_vm3 = vcmask 155728   ;;  %vm589_vm4 = vcmask 237728   ;;  %vm654_vm5 = vcmask 401728   ;;  %vm719_vm6 = vcmask 565728  }
  0x33   : > { %s582_s28 = sld [smem:[#allocation5 + %s1256_s18]] }
  0x34   : > { %s431_s23 = scalar_lea.vmem %s1745_s6, %s909_s21  ;;  %s558_s6 = sld [smem:[#allocation4 + %s1276_s27]] }
  0x35   : > { %s427_s29 = scalar_lea.vmem %s1746_s5, %s909_s21  ;;  %v455_v1 = vld [vmem:[%s431_s23] sm:$0xff]  ;;  %s517_s21 = sld [smem:[#allocation4 + %s1256_s18]] }
  0x36   : > { %v433_v2 = vld [vmem:[%s427_s29] sm:$0xff]  ;;  %459 = vperm.xlu1 %968, %v455_v1   ;;  %s1285_s23 = sadd.s32 1, %s1256_s18  ;;  %s1105_s5 = smov 10  }
  0x37   : > { %437 = vperm.xlu0 %967, %v433_v2   ;;  %s591_s17 = sld [smem:[#allocation5 + %s1285_s23]] }
  0x38   : > { %s543_s7 = scalar_lea.vmem %s1747_s8, %s542_s1  ;;  %s535_s29 = scalar_lea.vmem %s1747_s8, %s534_s24 }
  0x39   : > { %v544_v3 = vld [vmem:[%s543_s7] sm:$0x1]  ;;  %s567_s7 = scalar_lea.vmem %s1747_s8, %s566_s4  ;;  %s526_s2 = sld [smem:[#allocation4 + %s1285_s23]] }
  0x3a   : > { %v536_v4 = vld [vmem:[%s535_s29] sm:$0x1]  ;;  %s559_s26 = scalar_lea.vmem %s1747_s8, %s558_s6  ;;  %s550_s25 = sld [smem:[#allocation4 + %s1306_s3]] }
  0x3b   : > { %s518_s29 = scalar_lea.vmem %s1747_s8, %s517_s21  ;;  %v568_v6 = vld [vmem:[%s567_s7] sm:$0x1]  ;;  %s615_s22 = sld [smem:[#allocation5 + %s1306_s3]] }
  0x3c   : > { %v519_v5 = vld [vmem:[%s518_s29] sm:$0x1]  ;;  %s583_s24 = scalar_lea.vmem %s1699_s9, %s582_s28  ;;  %s607_s29 = sld [smem:[#allocation5 + %s1259_s19]] }
  0x3d   : > { %v560_v7 = vld [vmem:[%s559_s26] sm:$0x1]  ;;  %521 = vrot.lane.b32.xlu2 %v519_v5, %s1105_s5  ;;  %s592_s21 = scalar_lea.vmem %s1699_s9, %s591_s17  ;;  %s631_s1 = sld [smem:[#allocation5 + %s1272_s30]] }
  0x3e   : > { %546 = vrot.lane.b32.xlu1 %v544_v3, %s1105_s5  ;;  %v593_v9 = vld [vmem:[%s592_s21] sm:$0x1]  ;;  %s599_s15 = sld [smem:[#allocation5 + %s1262_s20]]  ;;  %s1748_s28 = smov 20  }
  0x3f   : > { %538 = vrot.lane.b32.xlu0 %v536_v4, %s1105_s5  ;;  %s527_s6 = scalar_lea.vmem %s1747_s8, %s526_s2  ;;  %v584_v10 = vld [vmem:[%s583_s24] sm:$0x1]  ;;  %s1324_s2 = sadd.s32 7, %s1256_s18 }
  0x40   : > { %v528_v8 = vld [vmem:[%s527_s6] sm:$0x1]  ;;  %s551_s17 = scalar_lea.vmem %s1747_s8, %s550_s25  ;;  %s574_s16 = sld [smem:[#allocation4 + %s1324_s2]] }
  0x41   : > { %s616_s21 = scalar_lea.vmem %s1699_s9, %s615_s22  ;;  %s639_s7 = sld [smem:[#allocation5 + %s1324_s2]]  ;;  %v552_v11 = vld [vmem:[%s551_s17] sm:$0x1] }
  0x42   : > { %s608_s4 = scalar_lea.vmem %s1699_s9, %s607_s29  ;;  %v617_v12 = vld [vmem:[%s616_s21] sm:$0x1]  ;;  %s664_s22 = sld [smem:[#allocation6 + %s1262_s20]] }
  0x43   : > { %v609_v13 = vld [vmem:[%s608_s4] sm:$0x1]  ;;  %s656_s29 = sld [smem:[#allocation6 + %s1285_s23]]  ;;  %s632_s4 = scalar_lea.vmem %s1699_s9, %s631_s1 }
  0x44   : > { %v633_v16 = vld [vmem:[%s632_s4] sm:$0x1]  ;;  %s600_s25 = scalar_lea.vmem %s1699_s9, %s599_s15  ;;  %s680_s17 = sld [smem:[#allocation6 + %s1306_s3]] }
  0x45   : > { %530 = vrot.lane.b32.xlu2 %v528_v8, %s1105_s5  ;;  %v601_v17 = vld [vmem:[%s600_s25] sm:$0x1]  ;;  %s647_s13 = sld [smem:[#allocation6 + %s1256_s18]] }
  0x46   : > { %570 = vrot.lane.b32.xlu1 %v568_v6, %s1105_s5  ;;  %s704_s1 = sld [smem:[#allocation6 + %s1324_s2]] }
  0x47   : > { %562 = vrot.lane.b32.xlu0 %v560_v7, %s1105_s5  ;;  %s640_s21 = scalar_lea.vmem %s1699_s9, %s639_s7  ;;  %s688_s7 = sld [smem:[#allocation6 + %s1276_s27]] }
  0x48   : > { %v641_v15 = vld [vmem:[%s640_s21] sm:$0x1]  ;;  %s665_s6 = scalar_lea.vmem %s1700_s10, %s664_s22  ;;  %s712_s22 = sld [smem:[#allocation7 + %s1256_s18]] }
  0x49   : > { %v666_v18 = vld [vmem:[%s665_s6] sm:$0x1]  ;;  %s737_s24 = sld [smem:[#allocation7 + %s1259_s19]] }
  0x4a   : > { %s681_s26 = scalar_lea.vmem %s1700_s10, %s680_s17  ;;  %s1749_s6 = sld [smem:[#allocation26_spill]] }
  0x4b   : > { %v682_v22 = vld [vmem:[%s681_s26] sm:$0x1]  ;;  %s648_s15 = scalar_lea.vmem %s1700_s10, %s647_s13  ;;  %s1108_s13 = smov 60  }
  0x4c   : > { %v649_v23 = vld [vmem:[%s648_s15] sm:$0x1]  ;;  %s696_s15 = sld [smem:[#allocation6 + %s1272_s30]] }
  0x4d   : > { %554 = vrot.lane.b32.xlu2 %v552_v11, %s1105_s5  ;;  %s1750_s26 = sld [smem:[#allocation25_spill]] }
  0x4e   : > { %595 = vrot.lane.b32.xlu1 %v593_v9, %s1723_s0  ;;  %s713_s17 = scalar_lea.vmem %s1701_s11, %s712_s22 }
  0x4f   : > { %586 = vrot.lane.b32.xlu0 %v584_v10, %s1723_s0  ;;  %s575_s0 = scalar_lea.vmem %s1747_s8, %s574_s16  ;;  %s623_s8 = sld [smem:[#allocation5 + %s1276_s27]]  ;;  %v714_v24 = vld [vmem:[%s713_s17] sm:$0x1] }
  0x50   : > { %v576_v14 = vld [vmem:[%s575_s0] sm:$0x1]  ;;  %s1107_s16 = smov 40   ;;  %s689_s0 = scalar_lea.vmem %s1700_s10, %s688_s7 }
  0x51   : > { %v690_v21 = vld [vmem:[%s689_s0] sm:$0x1]  ;;  %s738_s22 = scalar_lea.vmem %s1701_s11, %s737_s24  ;;  %s721_s0 = sld [smem:[#allocation7 + %s1285_s23]] }
  0x52   : > { %v739_v26 = vld [vmem:[%s738_s22] sm:$0x1]  ;;  %s745_s22 = sld [smem:[#allocation7 + %s1306_s3]] }
  0x53   : > { %v970_v34 = vld [vmem:[%s1749_s6] ss:$0 sm:$0xff] }
  0x54   : > { %v972_v35 = vld [vmem:[%s1750_s26] ss:$0 sm:$0xff] }
  0x55   : > { %578 = vrot.lane.b32.xlu2 %v576_v14, %s1105_s5  ;;  %s657_s5 = scalar_lea.vmem %s1700_s10, %s656_s29  ;;  %s624_s4 = scalar_lea.vmem %s1699_s9, %s623_s8 }
  0x56   : > { %619 = vrot.lane.b32.xlu1 %v617_v12, %s1748_s28  ;;  %v658_v19 = vld [vmem:[%s657_s5] sm:$0x1]  ;;  %s729_s29 = sld [smem:[#allocation7 + %s1262_s20]] }
  0x57   : > { %611 = vrot.lane.b32.xlu0 %v609_v13, %s1748_s28  ;;  %v625_v20 = vld [vmem:[%s624_s4] sm:$0x1]  ;;  %s672_s5 = sld [smem:[#allocation6 + %s1259_s19]]  ;;  %s722_s21 = scalar_lea.vmem %s1701_s11, %s721_s0 }
  0x58   : > { %v723_v30 = vld [vmem:[%s722_s21] sm:$0x1]  ;;  %s753_s8 = sld [smem:[#allocation7 + %s1276_s27]] }
  0x59   : > { %s488_s0 = sld [smem:[#allocation3 + %s1262_s20]] }
  0x5a   : > { %s498_s21 = sld [smem:[#allocation3 + %s1306_s3]] }
  0x5b   : > { %s1529_s20 = sld [smem:[#allocation3 + %s1276_s27]] }
  0x5d   : > { %603 = vrot.lane.b32.xlu2 %v601_v17, %s1748_s28  ;;  %s673_s17 = scalar_lea.vmem %s1700_s10, %s672_s5  ;;  %s769_s5 = sld [smem:[#allocation7 + %s1324_s2]] }
  0x5e   : > { %643 = vrot.lane.b32.xlu1 %v641_v15, %s1748_s28  ;;  %v674_v28 = vld [vmem:[%s673_s17] sm:$0x1]  ;;  %s761_s17 = sld [smem:[#allocation7 + %s1272_s30]]  ;;  %s754_s4 = scalar_lea.vmem %s1701_s11, %s753_s8 }
  0x5f   : > { %635 = vrot.lane.b32.xlu0 %v633_v16, %s1748_s28  ;;  %v755_v44 = vld [vmem:[%s754_s4] sm:$0x1]  ;;  %s513_s8 = sld [smem:[#allocation3 + %s1324_s2]] }
  0x65   : > { %627 = vrot.lane.b32.xlu2 %v625_v20, %s1748_s28  ;;  %s705_s28 = scalar_lea.vmem %s1700_s10, %s704_s1  ;;  %s730_s1 = scalar_lea.vmem %s1701_s11, %s729_s29 }
  0x66   : > { %668 = vrot.lane.b32.xlu1 %v666_v18, %s1107_s16  ;;  %v706_v25 = vld [vmem:[%s705_s28] sm:$0x1]  ;;  %s697_s29 = scalar_lea.vmem %s1700_s10, %s696_s15  ;;  %s493_s28 = sld [smem:[#allocation3 + %s1259_s19]] }
  0x67   : > { %660 = vrot.lane.b32.xlu0 %v658_v19, %s1107_s16  ;;  %v731_v27 = vld [vmem:[%s730_s1] sm:$0x1]  ;;  %s746_s1 = scalar_lea.vmem %s1701_s11, %s745_s22 }
  0x68   : > { %v698_v29 = vld [vmem:[%s697_s29] sm:$0x1]  ;;  %s770_s29 = scalar_lea.vmem %s1701_s11, %s769_s5  ;;  %s1110_s5 = smov 30  }
  0x69   : > { %v747_v31 = vld [vmem:[%s746_s1] sm:$0x1]  ;;  %s1109_s1 = smov 50  }
  0x6a   : > { %v771_v40 = vld [vmem:[%s770_s29] sm:$0x1]  ;;  %s483_s29 = sld [smem:[#allocation3 + %s1285_s23]] }
  0x6d   : > { %651 = vrot.lane.b32.xlu2 %v649_v23, %s1107_s16 }
  0x6e   : > { %692 = vrot.lane.b32.xlu1 %v690_v21, %s1107_s16 }
  0x6f   : > { %684 = vrot.lane.b32.xlu0 %v682_v22, %s1107_s16 }
  0x75   : > { %676 = vrot.lane.b32.xlu2 %v674_v28, %s1107_s16 }
  0x76   : > { %716 = vrot.lane.b32.xlu1 %v714_v24, %s1108_s13 }
  0x77   : > { %708 = vrot.lane.b32.xlu0 %v706_v25, %s1107_s16 }
  0x7d   : > { %700 = vrot.lane.b32.xlu2 %v698_v29, %s1107_s16  ;;  %s762_s16 = scalar_lea.vmem %s1701_s11, %s761_s17  ;;  %s477_s17 = sld [smem:[#allocation3 + %s1256_s18]] }
  0x7e   : > { %741 = vrot.lane.b32.xlu1 %v739_v26, %s1108_s13  ;;  %v763_v43 = vld [vmem:[%s762_s16] sm:$0x1]  ;;  %s1753_s16 = sld [smem:[#allocation27_spill]] }
  0x7f   : > { %733 = vrot.lane.b32.xlu0 %v731_v27, %s1108_s13 }
  0x84   : > { %s788_s25 = scalar_lea.hbm %s1753_s16, %s1256_s18 }
  0x85   : > { %725 = vrot.lane.b32.xlu2 %v723_v30, %s1108_s13  ;;  %s792_s3 = sshll.u32 %s788_s25, 4  ;;  %s793_s3 = int_to_ptr.hbm [resolvable:$true] %s792_s3 }
  0x8d   : > { %749 = vrot.lane.b32.xlu2 %v747_v31, %s1108_s13 }
  0x95   : > { %773 = vrot.lane.b32.xlu2 %v771_v40, %s1108_s13 }
  0x97   : > { %v1457_v45 = vpop.permute.xlu2 %521 }
  0x9f   : > { %v1463_v48 = vpop.permute.xlu2 %530 }
  0xa7   : > { %v1469_v51 = vpop.permute.xlu2 %554 }
  0xa8   : > { %v460_v36 = vpop.permute.xlu1 %459 }
  0xa9   : > { %v438_v37 = vpop.permute.xlu0 %437  ;;  %v465_v38 = vmul.f32 %v969_v32, %v460_v36 }
  0xaa   : > { %v443_v39 = vmul.f32 %v971_v33, %v438_v37 }
  0xab   : > { %v470_v41 = vadd.f32 %v970_v34, %v465_v38 }
  0xac   : > { %v448_v42 = vadd.f32 %v972_v35, %v443_v39 }
  0xad   : > { %472 = vrot.lane.b32.xlu1 %v470_v41, %s1109_s1  ;;  %s1752_s1 = sld [smem:[#allocation23_spill]] }
  0xae   : > { %450 = vrot.lane.b32.xlu0 %v448_v42, %s1110_s5 }
  0xaf   : > { %v1475_v54 = vpop.permute.xlu2 %578 }
  0xb0   : > { %v1459_v46 = vpop.permute.xlu1 %546 }
  0xb1   : > { %v1461_v47 = vpop.permute.xlu0 %538 }
  0xb3   : > { %s478_s5 = scalar_lea.vmem %s1752_s1, %s477_s17  ;;  %s484_s7 = scalar_lea.vmem %s1752_s1, %s483_s29 }
  0xb4   : > { %s489_s19 = scalar_lea.vmem %s1752_s1, %s488_s0  ;;  %s494_s4 = scalar_lea.vmem %s1752_s1, %s493_s28  ;;  %v479_v10 = vld [vmem:[%s478_s5] sm:$0x1] }
  0xb5   : > { %765 = vrot.lane.b32.xlu1 %v763_v43, %s1108_s13  ;;  %v485_v12 = vld [vmem:[%s484_s7] sm:$0x1]  ;;  %s499_s26 = scalar_lea.vmem %s1752_s1, %s498_s21  ;;  %s504_s2 = scalar_lea.vmem %s1752_s1, %s1529_s20 }
  0xb6   : > { %757 = vrot.lane.b32.xlu0 %v755_v44, %s1108_s13  ;;  %s1751_s13 = sld [smem:[#allocation13_spill]]  ;;  %v490_v13 = vld [vmem:[%s489_s19] sm:$0x1]  ;;  %s514_s23 = scalar_lea.vmem %s1752_s1, %s513_s8 }
  0xb7   : > { %v1481_v57 = vpop.permute.xlu2 %603  ;;  %v495_v14 = vld [vmem:[%s494_s4] sm:$0x1]  ;;  %s1047_s4 = sshra.s32 %s793_s3, 4  ;;  %s1053_s8 = scalar_lea.hbm %s1753_s16, 16  ;;  %s1048_s4 = int_to_ptr.hbm [resolvable:$true] %s1047_s4 }
  0xb8   : > { %v1465_v49 = vpop.permute.xlu1 %570  ;;  %v500_v15 = vld [vmem:[%s499_s26] sm:$0x1]  ;;  %s1049_s17 = scalar_lea.hbm %s1048_s4, 8  ;;  %p1054_p0 = scmp.lt.s32.totalorder %s1048_s4, %s1753_s16 }
  0xb9   : > { %v1467_v50 = vpop.permute.xlu0 %562  ;;  %v505_v17 = vld [vmem:[%s504_s2] sm:$0x1]  ;;  %p1050_p11 = scmp.ne.s32.totalorder %s1048_s4, %s1049_s17  ;;  %p1055_p1 = scmp.lt.s32.totalorder %s1053_s8, %s1049_s17 }
  0xba   : > { %v515_v19 = vld [vmem:[%s514_s23] sm:$0x1] }
  0xbb   : > { %p1051_p12 = pnand %p1050_p11, %p1246_p5  ;;  %p1056_p2 = por %p1055_p1, %p1054_p0 }
  0xbc   : > { %s1725_s6 = sand.u32 1, %s1751_s13   ;;  %s1755_s18 = sand.u32 1, %s1751_s13  }
  0xbd   : > { %s908_s22 = sshll.u32 %s1725_s6, 3  ;;  %s508_s6 = sld [smem:[#allocation3 + %s1272_s30]] }
  0xbe   : > { %s1539_s0 = scalar_lea.vmem [#allocation8], %s908_s22  ;;  %s778_s24 = scalar_lea.sflag [#allocation9], %s1755_s18 }
  0xbf   : > { %v1487_v60 = vpop.permute.xlu2 %627  ;;  %s790_s20 = sshll.u32 %s1539_s0, 4  ;;  %p1052_p13 = pneg %p1051_p12  ;;  %s791_s20 = int_to_ptr.vmem [resolvable:$true] %s790_s20 }
  0xc0   : > { %v1471_v52 = vpop.permute.xlu1 %595 }
  0xc1   : > { %v1473_v53 = vpop.permute.xlu0 %586  ;;  %p1057_p3 = pnand %p1056_p2, %p1052_p13 }
  0xc3   : > { %s509_s22 = scalar_lea.vmem %s1752_s1, %s508_s6 }
  0xc4   : > { %v510_v18 = vld [vmem:[%s509_s22] sm:$0x1] }
  0xc7   : > { %v1493_v63 = vpop.permute.xlu2 %651 }
  0xc8   : > { %v1477_v55 = vpop.permute.xlu1 %619 }
  0xc9   : > { %v1479_v56 = vpop.permute.xlu0 %611 }
  0xcf   : > { %v1499_v2 = vpop.permute.xlu2 %676 }
  0xd0   : > { %v1483_v58 = vpop.permute.xlu1 %643 }
  0xd1   : > { %v1485_v59 = vpop.permute.xlu0 %635 }
  0xd7   : > { %v1503_v5 = vpop.permute.xlu2 %700 }
  0xd8   : > { %v1489_v61 = vpop.permute.xlu1 %668 }
  0xd9   : > { %v1491_v62 = vpop.permute.xlu0 %660 }
  0xdf   : > { %v1517_v8 = vpop.permute.xlu2 %725 }
  0xe0   : > { %v1495_v0 = vpop.permute.xlu1 %692 }
  0xe1   : > { %v1497_v1 = vpop.permute.xlu0 %684 }
  0xe7   : > { %v750_v16 = vpop.permute.xlu2 %749 }
  0xe8   : > { %v1501_v3 = vpop.permute.xlu1 %716 }
  0xe9   : > { %v709_v4 = vpop.permute.xlu0 %708 }
  0xef   : > { %v774_v20 = vpop.permute.xlu2 %773 }
  0xf0   : > { %v1507_v6 = vpop.permute.xlu1 %741 }
  0xf1   : > { %v1509_v7 = vpop.permute.xlu0 %733 }
 0x11f   : > { %v473_v9 = vpop.permute.xlu1 %472 }
 0x120   : > { %v451_v11 = vpop.permute.xlu0 %450 }
 0x121   : > { %454 = vst.msk [vmem:[%s1539_s0] sm:$0xff] %vm453_vm0, %v451_v11 }
 0x122   : > { %476 = vst.msk [vmem:[%s1539_s0] sm:$0xff] %vm475_vm1, %v473_v9 }
 0x123   : > { %481 = vst.msk [vmem:[%s1539_s0] sm:$0x1] %vm480_vm2, %v479_v10 }
 0x124   : > { %486 = vst.msk [vmem:[%s1539_s0 + $0x1] sm:$0x1] %vm480_vm2, %v485_v12 }
 0x125   : > { %491 = vst.msk [vmem:[%s1539_s0 + $0x2] sm:$0x1] %vm480_vm2, %v490_v13 }
 0x126   : > { %496 = vst.msk [vmem:[%s1539_s0 + $0x3] sm:$0x1] %vm480_vm2, %v495_v14 }
 0x127   : > { %501 = vst.msk [vmem:[%s1539_s0 + $0x4] sm:$0x1] %vm480_vm2, %v500_v15  ;;  %v766_v21 = vpop.permute.xlu1 %765 }
 0x128   : > { %525 = vst.msk [vmem:[%s1539_s0] sm:$0x1] %vm524_vm3, %v1457_v45  ;;  %v758_v22 = vpop.permute.xlu0 %757 }
 0x129   : > { %533 = vst.msk [vmem:[%s1539_s0 + $0x1] sm:$0x1] %vm524_vm3, %v1463_v48 }
 0x12a   : > { %541 = vst.msk [vmem:[%s1539_s0 + $0x2] sm:$0x1] %vm524_vm3, %v1461_v47 }
 0x12b   : > { %549 = vst.msk [vmem:[%s1539_s0 + $0x3] sm:$0x1] %vm524_vm3, %v1459_v46 }
 0x12c   : > { %557 = vst.msk [vmem:[%s1539_s0 + $0x4] sm:$0x1] %vm524_vm3, %v1469_v51 }
 0x12d   : > { %506 = vst.msk [vmem:[%s1539_s0 + $0x5] sm:$0x1] %vm480_vm2, %v505_v17 }
 0x12e   : > { %511 = vst.msk [vmem:[%s1539_s0 + $0x6] sm:$0x1] %vm480_vm2, %v510_v18 }
 0x12f   : > { %516 = vst.msk [vmem:[%s1539_s0 + $0x7] sm:$0x1] %vm480_vm2, %v515_v19 }
 0x130   : > { %581 = vst.msk [vmem:[%s1539_s0 + $0x7] sm:$0x1] %vm524_vm3, %v1475_v54 }
 0x131   : > { %646 = vst.msk [vmem:[%s1539_s0 + $0x7] sm:$0x1] %vm589_vm4, %v1483_v58 }
 0x132   : > { %711 = vst.msk [vmem:[%s1539_s0 + $0x7] sm:$0x1] %vm654_vm5, %v709_v4 }
 0x133   : > { %776 = vst.msk [vmem:[%s1539_s0 + $0x7] sm:$0x1] %vm719_vm6, %v774_v20 }
 0x134   : > { %565 = vst.msk [vmem:[%s1539_s0 + $0x5] sm:$0x1] %vm524_vm3, %v1467_v50 }
 0x135   : > { %573 = vst.msk [vmem:[%s1539_s0 + $0x6] sm:$0x1] %vm524_vm3, %v1465_v49 }
 0x136   : > { %590 = vst.msk [vmem:[%s1539_s0] sm:$0x1] %vm589_vm4, %v1473_v53 }
 0x137   : > { %598 = vst.msk [vmem:[%s1539_s0 + $0x1] sm:$0x1] %vm589_vm4, %v1471_v52 }
 0x138   : > { %606 = vst.msk [vmem:[%s1539_s0 + $0x2] sm:$0x1] %vm589_vm4, %v1481_v57 }
 0x139   : > { %614 = vst.msk [vmem:[%s1539_s0 + $0x3] sm:$0x1] %vm589_vm4, %v1479_v56 }
 0x13a   : > { %622 = vst.msk [vmem:[%s1539_s0 + $0x4] sm:$0x1] %vm589_vm4, %v1477_v55 }
 0x13b   : > { %638 = vst.msk [vmem:[%s1539_s0 + $0x6] sm:$0x1] %vm589_vm4, %v1485_v59 }
 0x13c   : > { %703 = vst.msk [vmem:[%s1539_s0 + $0x6] sm:$0x1] %vm654_vm5, %v1503_v5 }
 0x13d   : > { %768 = vst.msk [vmem:[%s1539_s0 + $0x6] sm:$0x1] %vm719_vm6, %v766_v21 }
 0x13e   : > { %630 = vst.msk [vmem:[%s1539_s0 + $0x5] sm:$0x1] %vm589_vm4, %v1487_v60 }
 0x13f   : > { %655 = vst.msk [vmem:[%s1539_s0] sm:$0x1] %vm654_vm5, %v1493_v63 }
 0x140   : > { %663 = vst.msk [vmem:[%s1539_s0 + $0x1] sm:$0x1] %vm654_vm5, %v1491_v62 }
 0x141   : > { %671 = vst.msk [vmem:[%s1539_s0 + $0x2] sm:$0x1] %vm654_vm5, %v1489_v61 }
 0x142   : > { %679 = vst.msk [vmem:[%s1539_s0 + $0x3] sm:$0x1] %vm654_vm5, %v1499_v2 }
 0x143   : > { %687 = vst.msk [vmem:[%s1539_s0 + $0x4] sm:$0x1] %vm654_vm5, %v1497_v1 }
 0x144   : > { %695 = vst.msk [vmem:[%s1539_s0 + $0x5] sm:$0x1] %vm654_vm5, %v1495_v0 }
 0x145   : > { %760 = vst.msk [vmem:[%s1539_s0 + $0x5] sm:$0x1] %vm719_vm6, %v758_v22 }
 0x146   : > { %720 = vst.msk [vmem:[%s1539_s0] sm:$0x1] %vm719_vm6, %v1501_v3 }
 0x147   : > { %728 = vst.msk [vmem:[%s1539_s0 + $0x1] sm:$0x1] %vm719_vm6, %v1517_v8 }
 0x148   : > { %736 = vst.msk [vmem:[%s1539_s0 + $0x2] sm:$0x1] %vm719_vm6, %v1509_v7 }
 0x149   : > { %744 = vst.msk [vmem:[%s1539_s0 + $0x3] sm:$0x1] %vm719_vm6, %v1507_v6 }
 0x14a   : > { %752 = vst.msk [vmem:[%s1539_s0 + $0x4] sm:$0x1] %vm719_vm6, %v750_v16 }
 0x14b   : > { %1060 = shalt.err (!%p1057_p3)
}
 0x14c   : > { %916 = dma.vmem_to_hbm [thread:$0]  (%p1246_p5), %s791_s20, 128, %s793_s3, %s778_s24  }
 0x14d PF: > { %s1756_s13 = sld [smem:[#allocation15_spill]] }
 0x14e   : > { %s1757_s0 = sld [smem:[#allocation12_spill]] }
 0x153   : > { %p922_p4 = scmp.ge.s32.totalorder %s1756_s13, 2 }
 0x154   : > { %s804_s28 = sand.u32 1, %s1757_s0  }
 0x155   : > { %p919_p7 = pnand %p922_p4, %p1250_p6  ;;  %s805_s21 = scalar_lea.sflag [#allocation9], %s804_s28 }
 0x157   : > { %p920_p8 = pneg %p919_p7 }
 0x159   : > { %1080 = dma.done.wait (%p920_p8), %s805_s21, 128  }
 0x15a   : > { %1082 = vsyncadd (%p920_p8), %s805_s21, 4294967168  ;;  %s1759_s25 = sld [smem:[#allocation16_spill]] }
 0x15b   : > { %s1760_s2 = sld [smem:[#allocation13_spill]] }
 0x15c   : > { %s1761_s3 = sld [smem:[#allocation14_spill]] }
 0x15d   : > { %s1762_s24 = sld [smem:[#allocation17_spill]] }
 0x160   : > { %p54_p9 = scmp.ge.s32.totalorder %s1759_s25, 4  }
 0x162   :  { %56 = sbr.rel (!%p54_p9) target bundleno = 28 (0x1c), region = 142 }
 0x167   :  { %811 = vsyncpa [#allocation9], 1 }
 0x168   :  { %813 = vsyncpa [#allocation9 + $0x1], 1 }

</bundles_post_ra>
